<compile_context>
chip_gen: v7x
topology: tpu7x:2x2x1
jax: 0.10.0
libtpu: 0.0.40
codegen_flags: <defaults>
</compile_context>

<pallas_src>
import functools
import math

import jax
import jax.numpy as jnp
from jax import lax
from jax.experimental import pallas as pl
from jax.experimental.pallas import tpu as pltpu


def _round_up(x, m):
    return ((x + m - 1) // m) * m


def _vmem_limit_bytes():
    """Generation-aware VMEM budget: ~48 MiB on v7x (64 MiB/core), ~100 MiB on v5e/v6e."""
    cap = 64 * 1024 * 1024  # conservative default (v7x per-core VMEM)
    try:
        info = pltpu.get_tpu_info()
        cap = int(getattr(info, "vmem_capacity_bytes", cap) or cap)
    except Exception:
        pass
    return int(max(32 * 1024 * 1024, min(cap - 16 * 1024 * 1024, 100 * 1024 * 1024)))


def _pick_tile(n, vmem_limit):
    """Query/KV tile: 512 on big-VMEM parts, 256 on small; whole (8-rounded) seq if short."""
    base = 512 if vmem_limit >= 80 * 1024 * 1024 else 256
    if n <= base:
        return _round_up(n, 8)
    return base


def _mha_flash_kernel(xq_ref, xkv_ref, wqkv_hbm, bqkv_ref, o_ref,
                      w_scr, q_scr, kv_scr, m_scr, l_scr, acc_scr,
                      *, num_heads, head_dim, tk, n_valid, n_padded, compute_dtype):
    """One grid step = one (batch, query-tile, kv-tile) triple."""
    D = num_heads * head_dim
    qi = pl.program_id(1)
    ki = pl.program_id(2)
    n_kv = pl.num_programs(2)

    # ---- fused projection weights: single-buffered VMEM scratch, loaded once
    # per batch element (megacore-safe; avoids the default 2-deep pipeline
    # buffers for a grid-invariant input).
    @pl.when((qi == 0) & (ki == 0))
    def _load_weights():
        pltpu.sync_copy(wqkv_hbm, w_scr)

    # ---- project this KV block exactly once per batch element (first query
    # tile) and cache it for all later query tiles.
    @pl.when(qi == 0)
    def _project_kv():
        kv = jnp.dot(xkv_ref[0], w_scr[:, D:],
                     preferred_element_type=jnp.float32) + bqkv_ref[:, D:]
        off_w = pl.multiple_of(ki * tk, tk)
        kv_scr[pl.ds(off_w, tk), :] = kv.astype(kv_scr.dtype)

    # ---- per query tile: project Q once (softmax scale pre-folded into the
    # weights) and reset the online-softmax running state.
    @pl.when(ki == 0)
    def _project_q():
        q = jnp.dot(xq_ref[0], w_scr[:, :D],
                    preferred_element_type=jnp.float32) + bqkv_ref[:, :D]
        q_scr[...] = q.astype(q_scr.dtype)
        m_scr[...] = jnp.full(m_scr.shape, -jnp.inf, dtype=m_scr.dtype)
        l_scr[...] = jnp.zeros(l_scr.shape, dtype=l_scr.dtype)
        acc_scr[...] = jnp.zeros(acc_scr.shape, dtype=acc_scr.dtype)

    # ---- online-softmax update for this (query tile, kv tile) pair.
    off = pl.multiple_of(ki * tk, tk)
    kv_blk = kv_scr[pl.ds(off, tk), :]                      # (TK, 2D) compute_dtype

    needs_mask = n_padded != n_valid                        # Python-static
    if needs_mask:
        col = off + lax.broadcasted_iota(jnp.int32, (1, tk), 1)
        valid = col < n_valid                               # (1, TK)

    # Static unroll over heads: per-head live state here is only (TQ, TK)
    # (num_heads is small; head_dim is typically a multiple of 128 so these
    # slices are free lane slices).
    for h in range(num_heads):
        lo = h * head_dim
        hi = lo + head_dim
        qh = q_scr[:, lo:hi]                                # (TQ, hd)  compute_dtype
        kh = kv_blk[:, lo:hi]                               # (TK, hd)
        vh = kv_blk[:, D + lo:D + hi]                       # (TK, hd)

        # scores = qh @ kh^T, contraction on the last dim of both operands
        # (no explicit transpose -> no XLU shuffle); bf16 in, f32 accumulate.
        s = lax.dot_general(qh, kh, (((1,), (1,)), ((), ())),
                            preferred_element_type=jnp.float32)   # (TQ, TK)
        if needs_mask:
            s = jnp.where(valid, s, -jnp.inf)

        m_prev = m_scr[:, h:h + 1]                          # (TQ, 1)
        m_new = jnp.maximum(m_prev, jnp.max(s, axis=-1, keepdims=True))
        alpha = jnp.exp(m_prev - m_new)                     # (TQ, 1)
        p = jnp.exp(s - m_new)                              # (TQ, TK) f32

        l_scr[:, h:h + 1] = alpha * l_scr[:, h:h + 1] + jnp.sum(p, axis=-1, keepdims=True)
        pv = jnp.dot(p.astype(compute_dtype), vh,
                     preferred_element_type=jnp.float32)    # (TQ, hd)
        acc_scr[:, lo:hi] = alpha * acc_scr[:, lo:hi] + pv
        m_scr[:, h:h + 1] = m_new

    # ---- finalize: normalize with the EUP reciprocal and do one lane-dense
    # (TQ, D) store for this query tile.
    @pl.when(ki == n_kv - 1)
    def _finalize():
        outs = []
        for h in range(num_heads):
            lo = h * head_dim
            inv = pl.reciprocal(l_scr[:, h:h + 1], approx=True)
            outs.append(acc_scr[:, lo:lo + head_dim] * inv)
        o_ref[0] = jnp.concatenate(outs, axis=-1).astype(o_ref.dtype)


def multi_head_attention(x, wq, bq, wk, bk, wv, bv, *, num_heads,
                         compute_dtype=jnp.bfloat16, tile=None):
    """x: (B, N, D). wq/wk/wv: (D, D) pre-transposed to (in, out). b*: (1, D)."""
    B, N, D = x.shape
    assert D % num_heads == 0, "dim must be divisible by num_heads"
    head_dim = D // num_heads
    scale = 1.0 / math.sqrt(head_dim)

    vmem_limit = _vmem_limit_bytes()
    t = int(tile) if tile is not None else _pick_tile(N, vmem_limit)
    n_pad = _round_up(N, t)
    n_tiles = n_pad // t

    # Fused (Q|K|V) projection weight with the softmax scale folded into the Q
    # columns; cast to the MXU compute dtype.  Bias stays f32 (added after the
    # f32-accumulated matmul).
    wqkv = jnp.concatenate([wq * scale, wk, wv], axis=1).astype(compute_dtype)   # (D, 3D)
    bqkv = jnp.concatenate([bq * scale, bk, bv], axis=1).astype(jnp.float32)     # (1, 3D)

    x_c = x.astype(compute_dtype)
    if n_pad != N:
        x_c = jnp.pad(x_c, ((0, 0), (0, n_pad - N), (0, 0)))

    kernel = functools.partial(
        _mha_flash_kernel, num_heads=num_heads, head_dim=head_dim, tk=t,
        n_valid=N, n_padded=n_pad, compute_dtype=compute_dtype)

    itemsize_c = jnp.dtype(compute_dtype).itemsize
    cost = pl.CostEstimate(
        flops=2 * B * n_pad * D * (3 * D) + 4 * B * n_pad * n_pad * D,
        transcendentals=B * num_heads * n_pad * n_pad,
        bytes_accessed=(2 * B * n_pad * D + B * 3 * D * D) * itemsize_c
                       + B * n_pad * D * jnp.dtype(x.dtype).itemsize,
    )

    out_pad = pl.pallas_call(
        kernel,
        out_shape=jax.ShapeDtypeStruct((B, n_pad, D), x.dtype),
        grid_spec=pltpu.PrefetchScalarGridSpec(
            num_scalar_prefetch=0,
            grid=(B, n_tiles, n_tiles),
            in_specs=[
                # x, query tile: refetched only when qi changes.
                pl.BlockSpec((1, t, D), lambda b, qi, ki: (b, qi, 0)),
                # x, KV tile: only read while qi == 0; collapse to block 0 for
                # qi > 0 so later query tiles don't re-DMA the whole sequence.
                pl.BlockSpec((1, t, D),
                             lambda b, qi, ki: (b, jnp.where(qi == 0, ki, 0), 0)),
                # fused projection weight: raw HBM ref, copied once per batch
                # element into a single-buffered VMEM scratch.
                pl.BlockSpec(memory_space=pl.ANY),
                # fused bias (tiny), grid-invariant.
                pl.BlockSpec((1, 3 * D), lambda b, qi, ki: (0, 0)),
            ],
            out_specs=pl.BlockSpec((1, t, D), lambda b, qi, ki: (b, qi, 0)),
            scratch_shapes=[
                pltpu.VMEM((D, 3 * D), compute_dtype),       # w_scr  (single-buffered weights)
                pltpu.VMEM((t, D), compute_dtype),           # q_scr  (per query tile)
                pltpu.VMEM((n_pad, 2 * D), compute_dtype),   # kv_scr (projected K|V, per batch)
                pltpu.VMEM((t, num_heads), jnp.float32),     # m_scr  (running max)
                pltpu.VMEM((t, num_heads), jnp.float32),     # l_scr  (running denom)
                pltpu.VMEM((t, D), jnp.float32),             # acc_scr
            ]),
        compiler_params=pltpu.CompilerParams(
            # B "parallel" only: a v7x megacore split stays on B so each core
            # keeps a disjoint KV stream; qi/ki carry scratch state -> arbitrary.
            dimension_semantics=("parallel", "arbitrary", "arbitrary"),
            vmem_limit_bytes=vmem_limit),
        cost_estimate=cost,
    )(x_c, x_c, wqkv, bqkv)

    return out_pad[:, :N, :] if n_pad != N else out_pad


def _reference(x, wq, bq, wk, bk, wv, bv, num_heads):
    """Plain-JAX (f32) mirror of the PyTorch forward pass, for verification."""
    B, N, D = x.shape
    hd = D // num_heads
    q = (x @ wq + bq).reshape(B, N, num_heads, hd).transpose(0, 2, 1, 3)
    k = (x @ wk + bk).reshape(B, N, num_heads, hd).transpose(0, 2, 1, 3)
    v = (x @ wv + bv).reshape(B, N, num_heads, hd).transpose(0, 2, 1, 3)
    scores = jnp.einsum("bhnd,bhmd->bhnm", q, k) / math.sqrt(hd)
    attn = jax.nn.softmax(scores, axis=-1)
    out = jnp.einsum("bhnm,bhmd->bhnd", attn, v)
    return out.transpose(0, 2, 1, 3).reshape(B, N, D)


if __name__ == "__main__":
    # Small shapes consistent with the module: B=2, N=8 (seq), D=32, num_heads=4.
    B, N, D = 2, 8, 32
    NUM_HEADS = 4

    key = jax.random.PRNGKey(0)
    kx, kwq, kbq, kwk, kbk, kwv, kbv, kx2, kx3 = jax.random.split(key, 9)

    x = jax.random.normal(kx, (B, N, D), dtype=jnp.float32)
    bound = 1.0 / math.sqrt(D)

    def init_w(k):   # stored as (in, out) == W.T relative to torch
        return jax.random.uniform(k, (D, D), jnp.float32, -bound, bound)

    def init_b(k):
        return jax.random.uniform(k, (1, D), jnp.float32, -bound, bound)

    wq, bq = init_w(kwq), init_b(kbq)
    wk, bk = init_w(kwk), init_b(kbk)
    wv, bv = init_w(kwv), init_b(kbv)

    ref = _reference(x, wq, bq, wk, bk, wv, bv, NUM_HEADS)

    # 1) Performance path: bf16 MXU operands, f32 accumulation.
    out = multi_head_attention(x, wq, bq, wk, bk, wv, bv, num_heads=NUM_HEADS)
    out = jax.block_until_ready(out)
    assert out.shape == (B, N, D)
    assert jnp.allclose(out, ref, rtol=3e-2, atol=3e-2), "bf16 path mismatch vs reference"

    # 2) f32 compute path: tight check of the algorithm/layout (tolerance is
    #    dominated by the approximate EUP reciprocal in the normalization).
    out32 = multi_head_attention(x, wq, bq, wk, bk, wv, bv,
                                 num_heads=NUM_HEADS, compute_dtype=jnp.float32)
    out32 = jax.block_until_ready(out32)
    assert jnp.allclose(out32, ref, rtol=2e-3, atol=2e-3), "f32 path mismatch vs reference"

    # 3) Multi-tile flash path (3x3 query/kv tiles) via a tile override:
    #    exercises once-per-batch KV projection caching + online softmax.
    N2 = 24
    x2 = jax.random.normal(kx2, (B, N2, D), dtype=jnp.float32)
    out2 = multi_head_attention(x2, wq, bq, wk, bk, wv, bv, num_heads=NUM_HEADS,
                                compute_dtype=jnp.float32, tile=8)
    out2 = jax.block_until_ready(out2)
    ref2 = _reference(x2, wq, bq, wk, bk, wv, bv, NUM_HEADS)
    assert jnp.allclose(out2, ref2, rtol=2e-3, atol=2e-3), "multi-tile path mismatch"

    # 4) N not divisible by the tile: exercises padding + KV-column masking.
    N3 = 10
    x3 = jax.random.normal(kx3, (B, N3, D), dtype=jnp.float32)
    out3 = multi_head_attention(x3, wq, bq, wk, bk, wv, bv, num_heads=NUM_HEADS,
                                compute_dtype=jnp.float32)
    out3 = jax.block_until_ready(out3)
    ref3 = _reference(x3, wq, bq, wk, bk, wv, bv, NUM_HEADS)
    assert out3.shape == (B, N3, D)
    assert jnp.allclose(out3, ref3, rtol=2e-3, atol=2e-3), "padded/masked path mismatch"

    print("KERNEL_OK")
</pallas_src>

<mosaic_0001>
module attributes {stable_mosaic.version = 11 : i64} {
  func.func @_mha_flash_kernel(%arg0: i32, %arg1: i32, %arg2: i32, %arg3: memref<1x8x32xbf16, #tpu.memory_space<vmem>>, %arg4: memref<1x8x32xbf16, #tpu.memory_space<vmem>>, %arg5: memref<32x96xbf16, #tpu.memory_space<any>>, %arg6: memref<1x96xf32, #tpu.memory_space<vmem>>, %arg7: memref<1x8x32xf32, #tpu.memory_space<vmem>>, %arg8: memref<32x96xbf16, #tpu.memory_space<vmem>>, %arg9: memref<8x32xbf16, #tpu.memory_space<vmem>>, %arg10: memref<8x64xbf16, #tpu.memory_space<vmem>>, %arg11: memref<8x4xf32, #tpu.memory_space<vmem>>, %arg12: memref<8x4xf32, #tpu.memory_space<vmem>>, %arg13: memref<8x32xf32, #tpu.memory_space<vmem>>) attributes {dimension_semantics = [#tpu.dimension_semantics<parallel>, #tpu.dimension_semantics<arbitrary>, #tpu.dimension_semantics<arbitrary>], iteration_bounds = array<i64: 2, 1, 1>, scalar_prefetch = 0 : i64, scratch_operands = 6 : i64, tpu.core_type = #tpu.core_type<tc>, window_params = [{transform_indices = @transform_0, window_bounds = array<i64: 1, 8, 32>}, {transform_indices = @transform_1, window_bounds = array<i64: 1, 8, 32>}, {}, {pipeline_mode = #tpu.pipeline_mode<synchronous>, transform_indices = @transform_3, window_bounds = array<i64: 1, 96>}, {transform_indices = @transform_4, window_bounds = array<i64: 1, 8, 32>}]} {
    %c0_i32 = arith.constant 0 : i32
    %0 = arith.cmpi eq, %arg1, %c0_i32 : i32
    %c0_i32_0 = arith.constant 0 : i32
    %1 = arith.cmpi eq, %arg2, %c0_i32_0 : i32
    %2 = arith.andi %0, %1 : i1
    %3 = arith.extui %2 : i1 to i32
    %c0_i32_1 = arith.constant 0 : i32
    %4 = arith.cmpi ne, %3, %c0_i32_1 : i32
    scf.if %4 {
      "tpu.region"() ({
        %126 = tpu.sem_alloc : memref<!tpu.dma_semaphore, #tpu.memory_space<semaphore_mem>>
        tpu.enqueue_dma source(%arg5 : memref<32x96xbf16, #tpu.memory_space<any>>) target(%arg8 : memref<32x96xbf16, #tpu.memory_space<vmem>>) target_semaphore(%126 : memref<!tpu.dma_semaphore, #tpu.memory_space<semaphore_mem>>)
        tpu.wait_dma2 semaphore(%126 : memref<!tpu.dma_semaphore, #tpu.memory_space<semaphore_mem>>) src(%arg5 : memref<32x96xbf16, #tpu.memory_space<any>>) dst(%arg8 : memref<32x96xbf16, #tpu.memory_space<vmem>>)
        tpu.yield
      }) : () -> ()
    } else {
    }
    %c0_i32_2 = arith.constant 0 : i32
    %5 = arith.cmpi eq, %arg1, %c0_i32_2 : i32
    %6 = arith.extui %5 : i1 to i32
    %c0_i32_3 = arith.constant 0 : i32
    %7 = arith.cmpi ne, %6, %c0_i32_3 : i32
    scf.if %7 {
      %c0_73 = arith.constant 0 : index
      %c0_74 = arith.constant 0 : index
      %c0_75 = arith.constant 0 : index
      %126 = vector.load %arg4[%c0_73, %c0_74, %c0_75] : memref<1x8x32xbf16, #tpu.memory_space<vmem>>, vector<1x8x32xbf16>
      %127 = vector.shape_cast %126 : vector<1x8x32xbf16> to vector<8x32xbf16>
      %c0_76 = arith.constant 0 : index
      %c32 = arith.constant 32 : index
      %128 = vector.load %arg8[%c0_76, %c32] : memref<32x96xbf16, #tpu.memory_space<vmem>>, vector<32x64xbf16>
      %cst_77 = arith.constant dense<0.000000e+00> : vector<8x64xf32>
      %129 = tpu.matmul %127, %128, %cst_77 {dimension_numbers = #tpu.dot_dimension_numbers<[1], [0], [0], [1], [0, 0, 1, 1], [], []>} : vector<8x32xbf16>, vector<32x64xbf16>, vector<8x64xf32> -> vector<8x64xf32>
      %c0_78 = arith.constant 0 : index
      %c32_79 = arith.constant 32 : index
      %130 = vector.load %arg6[%c0_78, %c32_79] : memref<1x96xf32, #tpu.memory_space<vmem>>, vector<1x64xf32>
      %131 = vector.broadcast %130 : vector<1x64xf32> to vector<8x64xf32>
      %132 = arith.addf %129, %131 : vector<8x64xf32>
      %c8_i32_80 = arith.constant 8 : i32
      %133 = arith.muli %arg2, %c8_i32_80 : i32
      %134 = tpu.assume_multiple %133, 8 : i32
      %135 = arith.truncf %132 : vector<8x64xf32> to vector<8x64xbf16>
      %136 = arith.index_cast %134 : i32 to index
      %c0_81 = arith.constant 0 : index
      %137 = vector.load %arg10[%136, %c0_81] : memref<8x64xbf16, #tpu.memory_space<vmem>>, vector<8x64xbf16>
      tpu.vector_store %arg10[%136, %c0_81], %135 {strides = array<i32>} : memref<8x64xbf16, #tpu.memory_space<vmem>>, vector<8x64xbf16>,
    } else {
    }
    %c0_i32_4 = arith.constant 0 : i32
    %8 = arith.cmpi eq, %arg2, %c0_i32_4 : i32
    %9 = arith.extui %8 : i1 to i32
    %c0_i32_5 = arith.constant 0 : i32
    %10 = arith.cmpi ne, %9, %c0_i32_5 : i32
    scf.if %10 {
      %c0_73 = arith.constant 0 : index
      %c0_74 = arith.constant 0 : index
      %c0_75 = arith.constant 0 : index
      %126 = vector.load %arg3[%c0_73, %c0_74, %c0_75] : memref<1x8x32xbf16, #tpu.memory_space<vmem>>, vector<1x8x32xbf16>
      %127 = vector.shape_cast %126 : vector<1x8x32xbf16> to vector<8x32xbf16>
      %c0_76 = arith.constant 0 : index
      %c0_77 = arith.constant 0 : index
      %128 = vector.load %arg8[%c0_76, %c0_77] : memref<32x96xbf16, #tpu.memory_space<vmem>>, vector<32x32xbf16>
      %cst_78 = arith.constant dense<0.000000e+00> : vector<8x32xf32>
      %129 = tpu.matmul %127, %128, %cst_78 {dimension_numbers = #tpu.dot_dimension_numbers<[1], [0], [0], [1], [0, 0, 1, 1], [], []>} : vector<8x32xbf16>, vector<32x32xbf16>, vector<8x32xf32> -> vector<8x32xf32>
      %c0_79 = arith.constant 0 : index
      %c0_80 = arith.constant 0 : index
      %130 = vector.load %arg6[%c0_79, %c0_80] : memref<1x96xf32, #tpu.memory_space<vmem>>, vector<1x32xf32>
      %131 = vector.broadcast %130 : vector<1x32xf32> to vector<8x32xf32>
      %132 = arith.addf %129, %131 : vector<8x32xf32>
      %133 = arith.truncf %132 : vector<8x32xf32> to vector<8x32xbf16>
      %c0_81 = arith.constant 0 : index
      %c0_82 = arith.constant 0 : index
      %134 = vector.load %arg9[%c0_81, %c0_82] : memref<8x32xbf16, #tpu.memory_space<vmem>>, vector<8x32xbf16>
      tpu.vector_store %arg9[%c0_81, %c0_82], %133 {strides = array<i32>} : memref<8x32xbf16, #tpu.memory_space<vmem>>, vector<8x32xbf16>,
      %cst_83 = arith.constant 0xFF800000 : f32
      %135 = vector.broadcast %cst_83 : f32 to vector<8x4xf32>
      %c0_84 = arith.constant 0 : index
      %c0_85 = arith.constant 0 : index
      %136 = vector.load %arg11[%c0_84, %c0_85] : memref<8x4xf32, #tpu.memory_space<vmem>>, vector<8x4xf32>
      tpu.vector_store %arg11[%c0_84, %c0_85], %135 {strides = array<i32>} : memref<8x4xf32, #tpu.memory_space<vmem>>, vector<8x4xf32>,
      %cst_86 = arith.constant 0.000000e+00 : f32
      %137 = vector.broadcast %cst_86 : f32 to vector<8x4xf32>
      %c0_87 = arith.constant 0 : index
      %c0_88 = arith.constant 0 : index
      %138 = vector.load %arg12[%c0_87, %c0_88] : memref<8x4xf32, #tpu.memory_space<vmem>>, vector<8x4xf32>
      tpu.vector_store %arg12[%c0_87, %c0_88], %137 {strides = array<i32>} : memref<8x4xf32, #tpu.memory_space<vmem>>, vector<8x4xf32>,
      %cst_89 = arith.constant 0.000000e+00 : f32
      %139 = vector.broadcast %cst_89 : f32 to vector<8x32xf32>
      %c0_90 = arith.constant 0 : index
      %c0_91 = arith.constant 0 : index
      %140 = vector.load %arg13[%c0_90, %c0_91] : memref<8x32xf32, #tpu.memory_space<vmem>>, vector<8x32xf32>
      tpu.vector_store %arg13[%c0_90, %c0_91], %139 {strides = array<i32>} : memref<8x32xf32, #tpu.memory_space<vmem>>, vector<8x32xf32>,
    } else {
    }
    %c8_i32 = arith.constant 8 : i32
    %11 = arith.muli %arg2, %c8_i32 : i32
    %12 = tpu.assume_multiple %11, 8 : i32
    %13 = arith.index_cast %12 : i32 to index
    %c0 = arith.constant 0 : index
    %14 = vector.load %arg10[%13, %c0] : memref<8x64xbf16, #tpu.memory_space<vmem>>, vector<8x64xbf16>
    %c0_6 = arith.constant 0 : index
    %c0_7 = arith.constant 0 : index
    %15 = vector.load %arg9[%c0_6, %c0_7] : memref<8x32xbf16, #tpu.memory_space<vmem>>, vector<8x8xbf16>
    %16 = vector.extract_strided_slice %14 {offsets = [0, 0], sizes = [8, 8], strides = [1, 1]} : vector<8x64xbf16> to vector<8x8xbf16>
    %17 = vector.extract_strided_slice %14 {offsets = [0, 32], sizes = [8, 8], strides = [1, 1]} : vector<8x64xbf16> to vector<8x8xbf16>
    %cst = arith.constant dense<0.000000e+00> : vector<8x8xf32>
    %18 = tpu.matmul %15, %16, %cst {dimension_numbers = #tpu.dot_dimension_numbers<[1], [1], [0], [0], [0, 0, 1, 0], [], []>} : vector<8x8xbf16>, vector<8x8xbf16>, vector<8x8xf32> -> vector<8x8xf32>
    %c0_8 = arith.constant 0 : index
    %c0_9 = arith.constant 0 : index
    %19 = vector.load %arg11[%c0_8, %c0_9] : memref<8x4xf32, #tpu.memory_space<vmem>>, vector<8x1xf32>
    %cst_10 = arith.constant dense<0xFF800000> : vector<8xf32>
    %20 = vector.multi_reduction <maximumf>, %18, %cst_10 [1] : vector<8x8xf32> to vector<8xf32>
    %21 = vector.shape_cast %20 : vector<8xf32> to vector<8x1xf32>
    %22 = arith.maximumf %19, %21 : vector<8x1xf32>
    %23 = arith.subf %19, %22 : vector<8x1xf32>
    %24 = math.exp %23 : vector<8x1xf32>
    %25 = vector.broadcast %22 : vector<8x1xf32> to vector<8x8xf32>
    %26 = arith.subf %18, %25 : vector<8x8xf32>
    %27 = math.exp %26 : vector<8x8xf32>
    %c0_11 = arith.constant 0 : index
    %c0_12 = arith.constant 0 : index
    %28 = vector.load %arg12[%c0_11, %c0_12] : memref<8x4xf32, #tpu.memory_space<vmem>>, vector<8x1xf32>
    %29 = arith.mulf %24, %28 : vector<8x1xf32>
    %cst_13 = arith.constant dense<0.000000e+00> : vector<8xf32>
    %30 = vector.multi_reduction <add>, %27, %cst_13 [1] : vector<8x8xf32> to vector<8xf32>
    %31 = vector.shape_cast %30 : vector<8xf32> to vector<8x1xf32>
    %32 = arith.addf %29, %31 : vector<8x1xf32>
    %c0_14 = arith.constant 0 : index
    %c0_15 = arith.constant 0 : index
    %33 = vector.load %arg12[%c0_14, %c0_15] : memref<8x4xf32, #tpu.memory_space<vmem>>, vector<8x1xf32>
    tpu.vector_store %arg12[%c0_14, %c0_15], %32 {strides = array<i32>} : memref<8x4xf32, #tpu.memory_space<vmem>>, vector<8x1xf32>,
    %34 = arith.truncf %27 : vector<8x8xf32> to vector<8x8xbf16>
    %cst_16 = arith.constant dense<0.000000e+00> : vector<8x8xf32>
    %35 = tpu.matmul %34, %17, %cst_16 {dimension_numbers = #tpu.dot_dimension_numbers<[1], [0], [0], [1], [0, 0, 1, 1], [], []>} : vector<8x8xbf16>, vector<8x8xbf16>, vector<8x8xf32> -> vector<8x8xf32>
    %c0_17 = arith.constant 0 : index
    %c0_18 = arith.constant 0 : index
    %36 = vector.load %arg13[%c0_17, %c0_18] : memref<8x32xf32, #tpu.memory_space<vmem>>, vector<8x8xf32>
    %37 = vector.broadcast %24 : vector<8x1xf32> to vector<8x8xf32>
    %38 = arith.mulf %37, %36 : vector<8x8xf32>
    %39 = arith.addf %38, %35 : vector<8x8xf32>
    %c0_19 = arith.constant 0 : index
    %c0_20 = arith.constant 0 : index
    %40 = vector.load %arg13[%c0_19, %c0_20] : memref<8x32xf32, #tpu.memory_space<vmem>>, vector<8x8xf32>
    tpu.vector_store %arg13[%c0_19, %c0_20], %39 {strides = array<i32>} : memref<8x32xf32, #tpu.memory_space<vmem>>, vector<8x8xf32>,
    %c0_21 = arith.constant 0 : index
    %c0_22 = arith.constant 0 : index
    %41 = vector.load %arg11[%c0_21, %c0_22] : memref<8x4xf32, #tpu.memory_space<vmem>>, vector<8x1xf32>
    tpu.vector_store %arg11[%c0_21, %c0_22], %22 {strides = array<i32>} : memref<8x4xf32, #tpu.memory_space<vmem>>, vector<8x1xf32>,
    %c0_23 = arith.constant 0 : index
    %c8 = arith.constant 8 : index
    %42 = vector.load %arg9[%c0_23, %c8] : memref<8x32xbf16, #tpu.memory_space<vmem>>, vector<8x8xbf16>
    %43 = vector.extract_strided_slice %14 {offsets = [0, 8], sizes = [8, 8], strides = [1, 1]} : vector<8x64xbf16> to vector<8x8xbf16>
    %44 = vector.extract_strided_slice %14 {offsets = [0, 40], sizes = [8, 8], strides = [1, 1]} : vector<8x64xbf16> to vector<8x8xbf16>
    %cst_24 = arith.constant dense<0.000000e+00> : vector<8x8xf32>
    %45 = tpu.matmul %42, %43, %cst_24 {dimension_numbers = #tpu.dot_dimension_numbers<[1], [1], [0], [0], [0, 0, 1, 0], [], []>} : vector<8x8xbf16>, vector<8x8xbf16>, vector<8x8xf32> -> vector<8x8xf32>
    %c0_25 = arith.constant 0 : index
    %c1 = arith.constant 1 : index
    %46 = vector.load %arg11[%c0_25, %c1] : memref<8x4xf32, #tpu.memory_space<vmem>>, vector<8x1xf32>
    %cst_26 = arith.constant dense<0xFF800000> : vector<8xf32>
    %47 = vector.multi_reduction <maximumf>, %45, %cst_26 [1] : vector<8x8xf32> to vector<8xf32>
    %48 = vector.shape_cast %47 : vector<8xf32> to vector<8x1xf32>
    %49 = arith.maximumf %46, %48 : vector<8x1xf32>
    %50 = arith.subf %46, %49 : vector<8x1xf32>
    %51 = math.exp %50 : vector<8x1xf32>
    %52 = vector.broadcast %49 : vector<8x1xf32> to vector<8x8xf32>
    %53 = arith.subf %45, %52 : vector<8x8xf32>
    %54 = math.exp %53 : vector<8x8xf32>
    %c0_27 = arith.constant 0 : index
    %c1_28 = arith.constant 1 : index
    %55 = vector.load %arg12[%c0_27, %c1_28] : memref<8x4xf32, #tpu.memory_space<vmem>>, vector<8x1xf32>
    %56 = arith.mulf %51, %55 : vector<8x1xf32>
    %cst_29 = arith.constant dense<0.000000e+00> : vector<8xf32>
    %57 = vector.multi_reduction <add>, %54, %cst_29 [1] : vector<8x8xf32> to vector<8xf32>
    %58 = vector.shape_cast %57 : vector<8xf32> to vector<8x1xf32>
    %59 = arith.addf %56, %58 : vector<8x1xf32>
    %c0_30 = arith.constant 0 : index
    %c1_31 = arith.constant 1 : index
    %60 = vector.load %arg12[%c0_30, %c1_31] : memref<8x4xf32, #tpu.memory_space<vmem>>, vector<8x1xf32>
    tpu.vector_store %arg12[%c0_30, %c1_31], %59 {strides = array<i32>} : memref<8x4xf32, #tpu.memory_space<vmem>>, vector<8x1xf32>,
    %61 = arith.truncf %54 : vector<8x8xf32> to vector<8x8xbf16>
    %cst_32 = arith.constant dense<0.000000e+00> : vector<8x8xf32>
    %62 = tpu.matmul %61, %44, %cst_32 {dimension_numbers = #tpu.dot_dimension_numbers<[1], [0], [0], [1], [0, 0, 1, 1], [], []>} : vector<8x8xbf16>, vector<8x8xbf16>, vector<8x8xf32> -> vector<8x8xf32>
    %c0_33 = arith.constant 0 : index
    %c8_34 = arith.constant 8 : index
    %63 = vector.load %arg13[%c0_33, %c8_34] : memref<8x32xf32, #tpu.memory_space<vmem>>, vector<8x8xf32>
    %64 = vector.broadcast %51 : vector<8x1xf32> to vector<8x8xf32>
    %65 = arith.mulf %64, %63 : vector<8x8xf32>
    %66 = arith.addf %65, %62 : vector<8x8xf32>
    %c0_35 = arith.constant 0 : index
    %c8_36 = arith.constant 8 : index
    %67 = vector.load %arg13[%c0_35, %c8_36] : memref<8x32xf32, #tpu.memory_space<vmem>>, vector<8x8xf32>
    tpu.vector_store %arg13[%c0_35, %c8_36], %66 {strides = array<i32>} : memref<8x32xf32, #tpu.memory_space<vmem>>, vector<8x8xf32>,
    %c0_37 = arith.constant 0 : index
    %c1_38 = arith.constant 1 : index
    %68 = vector.load %arg11[%c0_37, %c1_38] : memref<8x4xf32, #tpu.memory_space<vmem>>, vector<8x1xf32>
    tpu.vector_store %arg11[%c0_37, %c1_38], %49 {strides = array<i32>} : memref<8x4xf32, #tpu.memory_space<vmem>>, vector<8x1xf32>,
    %c0_39 = arith.constant 0 : index
    %c16 = arith.constant 16 : index
    %69 = vector.load %arg9[%c0_39, %c16] : memref<8x32xbf16, #tpu.memory_space<vmem>>, vector<8x8xbf16>
    %70 = vector.extract_strided_slice %14 {offsets = [0, 16], sizes = [8, 8], strides = [1, 1]} : vector<8x64xbf16> to vector<8x8xbf16>
    %71 = vector.extract_strided_slice %14 {offsets = [0, 48], sizes = [8, 8], strides = [1, 1]} : vector<8x64xbf16> to vector<8x8xbf16>
    %cst_40 = arith.constant dense<0.000000e+00> : vector<8x8xf32>
    %72 = tpu.matmul %69, %70, %cst_40 {dimension_numbers = #tpu.dot_dimension_numbers<[1], [1], [0], [0], [0, 0, 1, 0], [], []>} : vector<8x8xbf16>, vector<8x8xbf16>, vector<8x8xf32> -> vector<8x8xf32>
    %c0_41 = arith.constant 0 : index
    %c2 = arith.constant 2 : index
    %73 = vector.load %arg11[%c0_41, %c2] : memref<8x4xf32, #tpu.memory_space<vmem>>, vector<8x1xf32>
    %cst_42 = arith.constant dense<0xFF800000> : vector<8xf32>
    %74 = vector.multi_reduction <maximumf>, %72, %cst_42 [1] : vector<8x8xf32> to vector<8xf32>
    %75 = vector.shape_cast %74 : vector<8xf32> to vector<8x1xf32>
    %76 = arith.maximumf %73, %75 : vector<8x1xf32>
    %77 = arith.subf %73, %76 : vector<8x1xf32>
    %78 = math.exp %77 : vector<8x1xf32>
    %79 = vector.broadcast %76 : vector<8x1xf32> to vector<8x8xf32>
    %80 = arith.subf %72, %79 : vector<8x8xf32>
    %81 = math.exp %80 : vector<8x8xf32>
    %c0_43 = arith.constant 0 : index
    %c2_44 = arith.constant 2 : index
    %82 = vector.load %arg12[%c0_43, %c2_44] : memref<8x4xf32, #tpu.memory_space<vmem>>, vector<8x1xf32>
    %83 = arith.mulf %78, %82 : vector<8x1xf32>
    %cst_45 = arith.constant dense<0.000000e+00> : vector<8xf32>
    %84 = vector.multi_reduction <add>, %81, %cst_45 [1] : vector<8x8xf32> to vector<8xf32>
    %85 = vector.shape_cast %84 : vector<8xf32> to vector<8x1xf32>
    %86 = arith.addf %83, %85 : vector<8x1xf32>
    %c0_46 = arith.constant 0 : index
    %c2_47 = arith.constant 2 : index
    %87 = vector.load %arg12[%c0_46, %c2_47] : memref<8x4xf32, #tpu.memory_space<vmem>>, vector<8x1xf32>
    tpu.vector_store %arg12[%c0_46, %c2_47], %86 {strides = array<i32>} : memref<8x4xf32, #tpu.memory_space<vmem>>, vector<8x1xf32>,
    %88 = arith.truncf %81 : vector<8x8xf32> to vector<8x8xbf16>
    %cst_48 = arith.constant dense<0.000000e+00> : vector<8x8xf32>
    %89 = tpu.matmul %88, %71, %cst_48 {dimension_numbers = #tpu.dot_dimension_numbers<[1], [0], [0], [1], [0, 0, 1, 1], [], []>} : vector<8x8xbf16>, vector<8x8xbf16>, vector<8x8xf32> -> vector<8x8xf32>
    %c0_49 = arith.constant 0 : index
    %c16_50 = arith.constant 16 : index
    %90 = vector.load %arg13[%c0_49, %c16_50] : memref<8x32xf32, #tpu.memory_space<vmem>>, vector<8x8xf32>
    %91 = vector.broadcast %78 : vector<8x1xf32> to vector<8x8xf32>
    %92 = arith.mulf %91, %90 : vector<8x8xf32>
    %93 = arith.addf %92, %89 : vector<8x8xf32>
    %c0_51 = arith.constant 0 : index
    %c16_52 = arith.constant 16 : index
    %94 = vector.load %arg13[%c0_51, %c16_52] : memref<8x32xf32, #tpu.memory_space<vmem>>, vector<8x8xf32>
    tpu.vector_store %arg13[%c0_51, %c16_52], %93 {strides = array<i32>} : memref<8x32xf32, #tpu.memory_space<vmem>>, vector<8x8xf32>,
    %c0_53 = arith.constant 0 : index
    %c2_54 = arith.constant 2 : index
    %95 = vector.load %arg11[%c0_53, %c2_54] : memref<8x4xf32, #tpu.memory_space<vmem>>, vector<8x1xf32>
    tpu.vector_store %arg11[%c0_53, %c2_54], %76 {strides = array<i32>} : memref<8x4xf32, #tpu.memory_space<vmem>>, vector<8x1xf32>,
    %c0_55 = arith.constant 0 : index
    %c24 = arith.constant 24 : index
    %96 = vector.load %arg9[%c0_55, %c24] : memref<8x32xbf16, #tpu.memory_space<vmem>>, vector<8x8xbf16>
    %97 = vector.extract_strided_slice %14 {offsets = [0, 24], sizes = [8, 8], strides = [1, 1]} : vector<8x64xbf16> to vector<8x8xbf16>
    %98 = vector.extract_strided_slice %14 {offsets = [0, 56], sizes = [8, 8], strides = [1, 1]} : vector<8x64xbf16> to vector<8x8xbf16>
    %cst_56 = arith.constant dense<0.000000e+00> : vector<8x8xf32>
    %99 = tpu.matmul %96, %97, %cst_56 {dimension_numbers = #tpu.dot_dimension_numbers<[1], [1], [0], [0], [0, 0, 1, 0], [], []>} : vector<8x8xbf16>, vector<8x8xbf16>, vector<8x8xf32> -> vector<8x8xf32>
    %c0_57 = arith.constant 0 : index
    %c3 = arith.constant 3 : index
    %100 = vector.load %arg11[%c0_57, %c3] : memref<8x4xf32, #tpu.memory_space<vmem>>, vector<8x1xf32>
    %cst_58 = arith.constant dense<0xFF800000> : vector<8xf32>
    %101 = vector.multi_reduction <maximumf>, %99, %cst_58 [1] : vector<8x8xf32> to vector<8xf32>
    %102 = vector.shape_cast %101 : vector<8xf32> to vector<8x1xf32>
    %103 = arith.maximumf %100, %102 : vector<8x1xf32>
    %104 = arith.subf %100, %103 : vector<8x1xf32>
    %105 = math.exp %104 : vector<8x1xf32>
    %106 = vector.broadcast %103 : vector<8x1xf32> to vector<8x8xf32>
    %107 = arith.subf %99, %106 : vector<8x8xf32>
    %108 = math.exp %107 : vector<8x8xf32>
    %c0_59 = arith.constant 0 : index
    %c3_60 = arith.constant 3 : index
    %109 = vector.load %arg12[%c0_59, %c3_60] : memref<8x4xf32, #tpu.memory_space<vmem>>, vector<8x1xf32>
    %110 = arith.mulf %105, %109 : vector<8x1xf32>
    %cst_61 = arith.constant dense<0.000000e+00> : vector<8xf32>
    %111 = vector.multi_reduction <add>, %108, %cst_61 [1] : vector<8x8xf32> to vector<8xf32>
    %112 = vector.shape_cast %111 : vector<8xf32> to vector<8x1xf32>
    %113 = arith.addf %110, %112 : vector<8x1xf32>
    %c0_62 = arith.constant 0 : index
    %c3_63 = arith.constant 3 : index
    %114 = vector.load %arg12[%c0_62, %c3_63] : memref<8x4xf32, #tpu.memory_space<vmem>>, vector<8x1xf32>
    tpu.vector_store %arg12[%c0_62, %c3_63], %113 {strides = array<i32>} : memref<8x4xf32, #tpu.memory_space<vmem>>, vector<8x1xf32>,
    %115 = arith.truncf %108 : vector<8x8xf32> to vector<8x8xbf16>
    %cst_64 = arith.constant dense<0.000000e+00> : vector<8x8xf32>
    %116 = tpu.matmul %115, %98, %cst_64 {dimension_numbers = #tpu.dot_dimension_numbers<[1], [0], [0], [1], [0, 0, 1, 1], [], []>} : vector<8x8xbf16>, vector<8x8xbf16>, vector<8x8xf32> -> vector<8x8xf32>
    %c0_65 = arith.constant 0 : index
    %c24_66 = arith.constant 24 : index
    %117 = vector.load %arg13[%c0_65, %c24_66] : memref<8x32xf32, #tpu.memory_space<vmem>>, vector<8x8xf32>
    %118 = vector.broadcast %105 : vector<8x1xf32> to vector<8x8xf32>
    %119 = arith.mulf %118, %117 : vector<8x8xf32>
    %120 = arith.addf %119, %116 : vector<8x8xf32>
    %c0_67 = arith.constant 0 : index
    %c24_68 = arith.constant 24 : index
    %121 = vector.load %arg13[%c0_67, %c24_68] : memref<8x32xf32, #tpu.memory_space<vmem>>, vector<8x8xf32>
    tpu.vector_store %arg13[%c0_67, %c24_68], %120 {strides = array<i32>} : memref<8x32xf32, #tpu.memory_space<vmem>>, vector<8x8xf32>,
    %c0_69 = arith.constant 0 : index
    %c3_70 = arith.constant 3 : index
    %122 = vector.load %arg11[%c0_69, %c3_70] : memref<8x4xf32, #tpu.memory_space<vmem>>, vector<8x1xf32>
    tpu.vector_store %arg11[%c0_69, %c3_70], %103 {strides = array<i32>} : memref<8x4xf32, #tpu.memory_space<vmem>>, vector<8x1xf32>,
    %c0_i32_71 = arith.constant 0 : i32
    %123 = arith.cmpi eq, %arg2, %c0_i32_71 : i32
    %124 = arith.extui %123 : i1 to i32
    %c0_i32_72 = arith.constant 0 : i32
    %125 = arith.cmpi ne, %124, %c0_i32_72 : i32
    scf.if %125 {
      %c0_73 = arith.constant 0 : index
      %c0_74 = arith.constant 0 : index
      %126 = vector.load %arg12[%c0_73, %c0_74] : memref<8x4xf32, #tpu.memory_space<vmem>>, vector<8x1xf32>
      %127 = tpu.reciprocal %126 {approx = true} : vector<8x1xf32> -> vector<8x1xf32>
      %c0_75 = arith.constant 0 : index
      %c0_76 = arith.constant 0 : index
      %128 = vector.load %arg13[%c0_75, %c0_76] : memref<8x32xf32, #tpu.memory_space<vmem>>, vector<8x8xf32>
      %129 = vector.broadcast %127 : vector<8x1xf32> to vector<8x8xf32>
      %130 = arith.mulf %128, %129 : vector<8x8xf32>
      %c0_77 = arith.constant 0 : index
      %c1_78 = arith.constant 1 : index
      %131 = vector.load %arg12[%c0_77, %c1_78] : memref<8x4xf32, #tpu.memory_space<vmem>>, vector<8x1xf32>
      %132 = tpu.reciprocal %131 {approx = true} : vector<8x1xf32> -> vector<8x1xf32>
      %c0_79 = arith.constant 0 : index
      %c8_80 = arith.constant 8 : index
      %133 = vector.load %arg13[%c0_79, %c8_80] : memref<8x32xf32, #tpu.memory_space<vmem>>, vector<8x8xf32>
      %134 = vector.broadcast %132 : vector<8x1xf32> to vector<8x8xf32>
      %135 = arith.mulf %133, %134 : vector<8x8xf32>
      %c0_81 = arith.constant 0 : index
      %c2_82 = arith.constant 2 : index
      %136 = vector.load %arg12[%c0_81, %c2_82] : memref<8x4xf32, #tpu.memory_space<vmem>>, vector<8x1xf32>
      %137 = tpu.reciprocal %136 {approx = true} : vector<8x1xf32> -> vector<8x1xf32>
      %c0_83 = arith.constant 0 : index
      %c16_84 = arith.constant 16 : index
      %138 = vector.load %arg13[%c0_83, %c16_84] : memref<8x32xf32, #tpu.memory_space<vmem>>, vector<8x8xf32>
      %139 = vector.broadcast %137 : vector<8x1xf32> to vector<8x8xf32>
      %140 = arith.mulf %138, %139 : vector<8x8xf32>
      %c0_85 = arith.constant 0 : index
      %c3_86 = arith.constant 3 : index
      %141 = vector.load %arg12[%c0_85, %c3_86] : memref<8x4xf32, #tpu.memory_space<vmem>>, vector<8x1xf32>
      %142 = tpu.reciprocal %141 {approx = true} : vector<8x1xf32> -> vector<8x1xf32>
      %c0_87 = arith.constant 0 : index
      %c24_88 = arith.constant 24 : index
      %143 = vector.load %arg13[%c0_87, %c24_88] : memref<8x32xf32, #tpu.memory_space<vmem>>, vector<8x8xf32>
      %144 = vector.broadcast %142 : vector<8x1xf32> to vector<8x8xf32>
      %145 = arith.mulf %143, %144 : vector<8x8xf32>
      %146 = tpu.concatenate %130, %135, %140, %145 in 1 : vector<8x8xf32>, vector<8x8xf32>, vector<8x8xf32>, vector<8x8xf32> -> vector<8x32xf32>
      %c0_89 = arith.constant 0 : index
      %c0_90 = arith.constant 0 : index
      %c0_91 = arith.constant 0 : index
      %147 = vector.load %arg7[%c0_89, %c0_90, %c0_91] : memref<1x8x32xf32, #tpu.memory_space<vmem>>, vector<1x8x32xf32>
      %148 = vector.shape_cast %147 : vector<1x8x32xf32> to vector<8x32xf32>
      %149 = vector.shape_cast %146 : vector<8x32xf32> to vector<1x8x32xf32>
      tpu.vector_store %arg7[%c0_89, %c0_90, %c0_91], %149 {strides = array<i32>} : memref<1x8x32xf32, #tpu.memory_space<vmem>>, vector<1x8x32xf32>,
    } else {
    }
    return
  }
  func.func @transform_0(%arg0: i32, %arg1: i32, %arg2: i32) -> (i32, i32, i32) {
    %c0_i32 = arith.constant 0 : i32
    %c0_i32_0 = arith.constant 0 : i32
    return %arg0, %arg1, %c0_i32 : i32, i32, i32
  }
  func.func @transform_1(%arg0: i32, %arg1: i32, %arg2: i32) -> (i32, i32, i32) {
    %c0_i32 = arith.constant 0 : i32
    %0 = arith.cmpi eq, %arg1, %c0_i32 : i32
    %c0_i32_0 = arith.constant 0 : i32
    %1 = arith.select %0, %arg2, %c0_i32_0 : i32
    %c0_i32_1 = arith.constant 0 : i32
    %c0_i32_2 = arith.constant 0 : i32
    return %arg0, %1, %c0_i32_1 : i32, i32, i32
  }
  func.func @transform_3(%arg0: i32, %arg1: i32, %arg2: i32) -> (i32, i32) {
    %c0_i32 = arith.constant 0 : i32
    %c0_i32_0 = arith.constant 0 : i32
    %c0_i32_1 = arith.constant 0 : i32
    return %c0_i32, %c0_i32_0 : i32, i32
  }
  func.func @transform_4(%arg0: i32, %arg1: i32, %arg2: i32) -> (i32, i32, i32) {
    %c0_i32 = arith.constant 0 : i32
    %c0_i32_0 = arith.constant 0 : i32
    return %arg0, %arg1, %c0_i32 : i32, i32, i32
  }
}

</mosaic_0001>

<bundles_post_ra>
// kernel: tpu_custom_call.1
= control target key start
LH: loop header
LB: loop body
LE: loop exit
PB: predicated region body
PF: predicated region fallthrough
CT: control target
= control target key end

     0   :  { %9 = vsyncpa [#allocation9], 0  ;;  %s1978_s0 = inlined_call_operand.hbm [shape: bf16[2,8,32], index: 0, kind: input, shape index: {}]   ;;  %s1979_s1 = inlined_call_operand.hbm [shape: bf16[2,8,32], index: 1, kind: input, shape index: {}]   ;;  %s1980_s2 = inlined_call_operand.hbm [shape: bf16[32,96], index: 2, kind: input, shape index: {}]   ;;  %s1981_s3 = inlined_call_operand.vmem [shape: f32[1,96], index: 3, kind: input, shape index: {}]   ;;  %s1982_s4 = inlined_call_operand.hbm [shape: f32[2,8,32], index: 4, kind: output, shape index: {}]  }
   0x1   :  { %11 = vsyncpa [#allocation9 + $0x1], 0 }
   0x2   :  { %12 = vsyncpa [#allocation12], 0 }
   0x3   :  { %14 = vsyncpa [#allocation12 + $0x1], 0 }
   0x4   :  { %15 = vsyncpa [#allocation10], 0 }
   0x5   :  { %17 = vsyncpa [#allocation10 + $0x1], 0  ;;  %s1601_s15 = smov 0   ;;  %s1603_s16 = smov 0  }
   0x6   :  { %s1605_s17 = smov 0   ;;  %s1607_s18 = smov 0  }
   0x7   :  { %s1609_s19 = smov 0   ;;  %s1611_s20 = smov 0  }
   0x8 LB: > { %s1147_s21 = sadd.s32 4294967295, %s1553_s20   ;;  %s1148_s22 = sadd.s32 4294967294, %s1553_s20   ;;  %s1553_s20 = sphi %s1611_s20, %s23_s20   ;;  %s1549_s19 = sphi %s1609_s19, %s2002_s19   ;;  %s1545_s18 = sphi %s1607_s18, %s2001_s18   ;;  %s1541_s17 = sphi %s1605_s17, %s2000_s17   ;;  %s1537_s16 = sphi %s1603_s16, %s1999_s16   ;;  %s1533_s15 = sphi %s1601_s15, %s1998_s15  }
   0x9   : > { %s42_s23 = sadd.s32 1, %s1549_s19  ;;  %s51_s24 = sadd.s32 1, %s1541_s17 }
   0xa   : > { %p44_p0 = scmp.ge.s32.totalorder %s42_s23, 2  ;;  %p58_p1 = scmp.ne.s32.totalorder %s1541_s17, %s1537_s16 }
   0xb   : > { %p59_p2 = scmp.eq.s32.totalorder %s1553_s20, 0  ;;  %p64_p3 = scmp.ne.s32.totalorder %s1537_s16, %s1533_s15 }
   0xc   : > { %s2004_s23 = smov (%p44_p0, %s42_s23), 0  ;;  %p65_p5 = scmp.eq.s32.totalorder %s1147_s21, 0 }
   0xd   : > { %p1642_p4 = por %p59_p2, %p58_p1  ;;  %s46_s26 = ssub.s32 %s1549_s19, %s2004_s23 }
   0xe   : > { %p143_p6 = scmp.eq.s32.totalorder %s1147_s21, 1  ;;  %p49_p7 = scmp.eq.s32.totalorder %s46_s26, 0 }
   0xf   : > { %p1648_p8 = por %p65_p5, %p64_p3  ;;  %p149_p10 = scmp.eq.s32.totalorder %s1148_s22, 1 }
  0x10   : > { %p1652_p9 = por %p143_p6, %p58_p1  ;;  %p1282_p13 = scmp.lt.s32.totalorder %s1553_s20, 2 }
  0x11   : > { %s1986_s27 = scalar_select %p1648_p8, 1, 0 }
  0x12   : > { %s1987_s28 = scalar_select %p1652_p9, 1, 0 }
  0x13   : > { %s1657_s29 = scalar_select %p49_p7, %s1541_s17, %s51_s24  }
  0x14   : > { %p1659_p11 = por %p149_p10, %p64_p3  ;;  %s1666_s5 = sand.u32 1, %s1541_s17  }
  0x15   : > { %s1151_s6 = sshll.u32 %s1666_s5, 2  ;;  %s1152_s7 = sshll.u32 %s1549_s19, 6 }
  0x16   : > { %s1988_s30 = scalar_select %p1659_p11, 1, 0 }
  0x17   : > { %s1675_s10 = scalar_lea.hbm %s1978_s0, %s1152_s7  ;;  %s176_s11 = scalar_lea.vmem [#allocation8], %s1151_s6 }
  0x18   : > { %s184_s12 = sshll.u32 %s176_s11, 4  ;;  %p1683_p0 = pnand %p1282_p13, %p1642_p4  ;;  %s1679_s12 = int_to_ptr.vmem [resolvable:$true] %s184_s12 }
  0x19   : > { %s173_s14 = scalar_lea.sflag [#allocation9], %s1666_s5  ;;  %s1383_s21 = scalar_lea.hbm %s1675_s10, 64 }
  0x1a   : > { %p1384_p3 = scmp.ne.s32.totalorder %s1675_s10, %s1383_s21  ;;  %p1385_p5 = pneg %p1683_p0 }
  0x1b   : > { %s1388_s25 = scalar_lea.hbm %s1978_s0, 128  ;;  %p1389_p4 = scmp.lt.u32.totalorder %s1675_s10, %s1978_s0 }
  0x1c   : > { %p1386_p6 = pnand %p1385_p5, %p1384_p3  ;;  %p1390_p10 = scmp.lt.u32.totalorder %s1388_s25, %s1383_s21 }
  0x1d   : > { %p1392_p12 = scmp.lt.u32.totalorder %s1383_s21, %s1675_s10 }
  0x1e   : > { %p1387_p7 = pneg %p1386_p6  ;;  %p1391_p13 = por %p1390_p10, %p1389_p4 }
  0x20   : > { %p1393_p1 = por %p1392_p12, %p1391_p13 }
  0x22   : > { %p1394_p2 = pnand %p1393_p1, %p1387_p7 }
  0x24   : > { %1397 = shalt.err (!%p1394_p2)
}
  0x25   : > { %s1398_s9 = scalar_lea.vmem %s1679_s12, 64  ;;  %s1555_s11 = smov [#allocation8]  }
  0x26   : > { %p1399_p3 = scmp.ne.s32.totalorder %s1679_s12, %s1398_s9  ;;  %s1403_s22 = sshll.u32 %s1555_s11, 4  ;;  %s1404_s22 = int_to_ptr.vmem [resolvable:$false] %s1403_s22 }
  0x27   : > { %s1405_s24 = scalar_lea.vmem %s1404_s22, 128  ;;  %p1406_p9 = scmp.lt.s32.totalorder %s1679_s12, %s1404_s22 }
  0x28   : > { %p1401_p6 = pnand %p1399_p3, %p1385_p5  ;;  %p1407_p4 = scmp.lt.s32.totalorder %s1405_s24, %s1398_s9 }
  0x2a   : > { %p1402_p11 = pneg %p1401_p6  ;;  %p1408_p10 = por %p1407_p4, %p1406_p9 }
  0x2c   : > { %p1409_p12 = pnand %p1408_p10, %p1402_p11 }
  0x2e   : > { %1412 = shalt.err (!%p1409_p12)
}
  0x2f   : > { %1274 = dma.hbm_to_vmem [thread:$0]  (!%p1683_p0), %s1675_s10, 64, %s1679_s12, %s173_s14  }
  0x30   : > { %p1990_p1 = scmp.lt.s32.totalorder %s1553_s20, 3  ;;  %p1991_p2 = scmp.ge.s32.totalorder %s1553_s20, 1 }
  0x31   : > { %s1728_s8 = scalar_lea.hbm %s1979_s1, %s1152_s7  ;;  %s195_s9 = scalar_lea.vmem [#allocation11], %s1151_s6 }
  0x32   : > { %p1719_p7 = pnand %p1991_p2, %p1990_p1  ;;  %s205_s11 = sshll.u32 %s195_s9, 4  ;;  %s206_s11 = int_to_ptr.vmem [resolvable:$true] %s205_s11 }
  0x33   : > { %s192_s10 = scalar_lea.sflag [#allocation12], %s1666_s5  ;;  %s1413_s12 = scalar_lea.hbm %s1728_s8, 64 }
  0x34   : > { %s1992_s21 = scalar_select %p1719_p7, 1, 0 }
  0x35   : > { %p1414_p9 = scmp.ne.s32.totalorder %s1728_s8, %s1413_s12  ;;  %s1418_s7 = scalar_lea.hbm %s1979_s1, 128 }
  0x36   : > { %p1419_p3 = scmp.lt.u32.totalorder %s1728_s8, %s1979_s1  ;;  %p1420_p6 = scmp.lt.u32.totalorder %s1418_s7, %s1413_s12 }
  0x37   : > { %p1416_p11 = pnand %p1414_p9, %p1385_p5  ;;  %p1422_p10 = scmp.lt.u32.totalorder %s1413_s12, %s1728_s8 }
  0x38   : > { %p1421_p4 = por %p1420_p6, %p1419_p3 }
  0x39   : > { %p1417_p13 = pneg %p1416_p11 }
  0x3a   : > { %p1423_p12 = por %p1422_p10, %p1421_p4 }
  0x3c   : > { %p1424_p1 = pnand %p1423_p12, %p1417_p13 }
  0x3e   : > { %1427 = shalt.err (!%p1424_p1)
}
  0x3f   : > { %s1428_s5 = scalar_lea.vmem %s206_s11, 64  ;;  %s1556_s6 = smov [#allocation11]  }
  0x40   : > { %p1429_p2 = scmp.ne.s32.totalorder %s206_s11, %s1428_s5  ;;  %s1433_s26 = sshll.u32 %s1556_s6, 4  ;;  %s1434_s26 = int_to_ptr.vmem [resolvable:$false] %s1433_s26 }
  0x41   : > { %s1435_s9 = scalar_lea.vmem %s1434_s26, 128  ;;  %p1436_p8 = scmp.lt.s32.totalorder %s206_s11, %s1434_s26 }
  0x42   : > { %p1431_p9 = pnand %p1429_p2, %p1385_p5  ;;  %p1437_p7 = scmp.lt.s32.totalorder %s1435_s9, %s1428_s5 }
  0x44   : > { %p1432_p11 = pneg %p1431_p9  ;;  %p1438_p3 = por %p1437_p7, %p1436_p8 }
  0x46   : > { %p1439_p6 = pnand %p1438_p3, %p1432_p11 }
  0x48   : > { %1442 = shalt.err (!%p1439_p6)
}
  0x49   : > { %1277 = dma.hbm_to_vmem [thread:$0]  (!%p1683_p0), %s1728_s8, 64, %s206_s11, %s192_s10  }
  0x4a   : > { %p1993_p13 = scmp.ne.s32.totalorder %s1992_s21, 0 }
  0x4b   : > { %s1755_s12 = sand.u32 (!%p1993_p13), 1, %s1537_s16   ;;  %p1994_p8 = scmp.ne.s32.totalorder (!%p1993_p13), %s1986_s27, 0 }
  0x4c   : > { %214 = sbr.rel (%p1993_p13) target bundleno = 1467 (0x5bb), region = 32  ;;  %s1156_s14 = sshll.u32 (!%p1993_p13), %s1755_s12, 2 }
  0x4d   : > { %s217_s22 = scalar_lea.sflag (!%p1993_p13), [#allocation9], %s1755_s12  ;;  %s1759_s7 = scalar_lea.vmem (!%p1993_p13), [#allocation8], %s1156_s14 }
  0x53   : > { %1518 = dma.done.wait (%p1994_p8), %s217_s22, 64  }
  0x54   : > { %1520 = vsyncadd (%p1994_p8), %s217_s22, 4294967232  ;;  %s226_s13 = scalar_lea.sflag [#allocation12], %s1755_s12  ;;  %s1766_s21 = scalar_lea.vmem [#allocation11], %s1156_s14 }
  0x55   : > { %1522 = dma.done.wait (%p1994_p8), %s226_s13, 64  }
  0x56   : > { %1524 = vsyncadd (%p1994_p8), %s226_s13, 4294967232  ;;  %s1158_s8 = sshll.u32 %s1755_s12, 3 }
  0x57   : > { %s1773_s11 = scalar_lea.vmem [#allocation13], %s1158_s8 }
  0x58   : > { %s1557_s10 = smov [#allocation2]   ;;  %s1443_s6 = scalar_lea.hbm %s1980_s2, 256 }
  0x59   : > { %s273_s24 = sshll.u32 %s1557_s10, 4  ;;  %p1444_p0 = scmp.ne.s32.totalorder %s1980_s2, %s1443_s6  ;;  %s274_s24 = int_to_ptr.vmem [resolvable:$true] %s273_s24 }
  0x5a   : > { %p1447_p5 = scmp.lt.u32.totalorder %s1443_s6, %s1980_s2 }
  0x5c   : > { %p1449_p7 = pnand %p1447_p5, %p1444_p0 }
  0x5e   : > { %1452 = shalt.err (!%p1449_p7)  }
  0x5f   : > { %s1453_s27 = scalar_lea.vmem %s274_s24, 256  ;;  %p1458_p10 = scmp.lt.s32.totalorder %s274_s24, %s274_s24 }
  0x60   : > { %p1454_p4 = scmp.ne.s32.totalorder %s274_s24, %s1453_s27  ;;  %p1459_p12 = scmp.lt.s32.totalorder %s1453_s27, %s1453_s27 }
  0x62   : > { %p1460_p1 = por %p1459_p12, %p1458_p10 }
  0x64   : > { %p1461_p2 = pnand %p1460_p1, %p1454_p4 }
  0x66   : > { %1464 = shalt.err (!%p1461_p2)  }
  0x67   : > { %276 = dma.hbm_to_vmem [thread:$0]  %s1980_s2, 256, %s274_s24, [#allocation14] }
  0x68   : > { %1525 = dma.done.wait [#allocation14], 256 }
  0x69   : > { %1526 = vsyncadd [#allocation14], 4294967040  ;;  %v285_v0 = vld [vmem:[#allocation2] sm:$0xff]  ;;  %vm304_vm0 = vcmask 261120   ;;  %s1558_s10 = smov 96   ;;  %v1559_v1 = vmov 0.0  }
  0x6a   : > { %295 = vrot.lane.b32.xlu0 %v285_v0, %s1558_s10  ;;  %1201 = vmatprep.subr.bf16.mxu0 %v1559_v1  ;;  %419 = vst.msk [vmem:[#allocation7] sm:$0xff] %vm304_vm0, %v1559_v1  ;;  %v1159_v2 = vld [vmem:[%s1981_s3] ss:$0 sm:$0xff]  ;;  %v286_v3 = vld [vmem:[#allocation2 + $0x8] sm:$0xff]  ;;  %vm1560_vm1 = vmmov 0   ;;  %vm414_vm2 = vcmask 257024  }
  0x6b   : > { %1209 = vmatprep.subr.bf16.mxu1 %v1559_v1  ;;  %1205 = vmatprep.mubr.msk.bf16.mxu0 %vm1560_vm1, %v1559_v1  ;;  %v359_v4 = vld [vmem:[%s1759_s7] sm:$0xf]  ;;  %v284_v7 = vld [vmem:[%s1766_s21] sm:$0xf]  ;;  %s1561_s7 = smov 120   ;;  %s1562_s21 = smov 112  }
  0x6c   : > { %1210 = vmatpush3.bf16.msra.mxu1 %v285_v0  ;;  %1213 = vmatprep.mubr.msk.bf16.mxu1 %vm1560_vm1, %v1559_v1  ;;  %s1563_s24 = smov 104   ;;  %vm354_vm3 = vcmask 519168   ;;  %vm427_vm4 = vcmask 64512   ;;  %vm416_vm5 = vcmask 31744   ;;  %v1564_v42 = vmov -inf   ;;  %s1568_s6 = smov 88  }
  0x6d   : > { %1211 = vmatprep.subr.bf16.mxu1 %v1559_v1  ;;  %301 = vrot.lane.b32.xlu1 %v1159_v2, %s1558_s10  ;;  %417 = vst.msk [vmem:[#allocation5] sm:$0xff] %vm416_vm5, %v1564_v42  ;;  %418 = vst.msk [vmem:[#allocation6] sm:$0xff] %vm416_vm5, %v1559_v1  ;;  %v1565_v43 = vmov 0   ;;  %v1566_v57 = vmov 1   ;;  %vm496_vm6 = vcmask 7168   ;;  %vm637_vm7 = vcmask 15368  }
  0x6e   : > { %297 = vrot.lane.b32.xlu0 %v286_v3, %s1558_s10  ;;  %1351 = vset.pattern.permute.xlu1 %v1566_v57  ;;  %vm779_vm8 = vcmask 23568   ;;  %vm921_vm9 = vcmask 31768   ;;  %s1570_s26 = smov 80   ;;  %s1571_s9 = smov 72   ;;  %vm507_vm10 = vcmask 1043456   ;;  %vm700_vm11 = vcmask 130112  }
  0x6f   : > { %1350 = vset.pattern.permute.xlu0 %v1565_v43  ;;  %s1572_s14 = smov 8   ;;  %s1573_s22 = smov 16   ;;  %vm842_vm12 = vcmask 195712   ;;  %vm984_vm13 = vcmask 261312   ;;  %vm1015_vm14 = vcmask 130048   ;;  %vm1017_vm15 = vcmask 195584  }
  0x70   : > { %1212 = vmatpush3.bf16.msra.mxu1 %v286_v3  ;;  %s1574_s27 = smov 24   ;;  %s1176_s13 = sshll.u32 %s1545_s18, 7 }
  0x71   : > { %1223 = vmatprep.subr.bf16.mxu1 %v1559_v1  ;;  %s1036_s8 = sshll.u32 %s1773_s11, 4  ;;  %s1927_s5 = scalar_lea.hbm %s1982_s4, %s1176_s13  ;;  %s1929_s8 = int_to_ptr.vmem [resolvable:$true] %s1036_s8 }
  0x72   : > { %s1022_s18 = scalar_lea.sflag [#allocation10], %s1755_s12  ;;  %p1995_p11 = scmp.ne.s32.totalorder %s1987_s28, 0 }
  0x73   : > { %1214 = vmatmul.mubr.msk.bf16.vlgmr.msra.gmra.mrb[0].mxu1 %vm304_vm0, %v359_v4 }
  0x74   : > { %1225 = vmatprep.mubr.msk.bf16.mxu1 %vm1560_vm1, %v1559_v1  ;;  %v474_v60 = vld [vmem:[#allocation5] sm:$0xff] }
  0xdc   : > { %v296_v5 = vpop.permute.xlu0 %295 }
  0xdd   : > { %1202 = vmatpush3.bf16.msra.mxu0 %v296_v5 }
  0xde   : > { %1203 = vmatprep.subr.bf16.mxu0 %v1559_v1 }
  0xdf   : > { %v302_v17 = vpop.permute.xlu1 %301 }
  0xe0   : > { %v298_v6 = vpop.permute.xlu0 %297 }
  0xe1   : > { %1204 = vmatpush3.bf16.msra.mxu0 %v298_v6 }
  0xe2   : > { %1217 = vmatprep.subr.bf16.mxu0 %v1559_v1 }
  0xe4   : > { %1206 = vmatmul.mubr.msk.bf16.vlgmr.msra.gmra.mrb[0].mxu0 %vm304_vm0, %v284_v7  ;;  %v1567_v7 = vmov 2  }
  0xe5   : > { %1219 = vmatprep.mubr.msk.bf16.mxu0 %vm1560_vm1, %v1559_v1 }
 0x146   : > { %v407_v8 = vpop.f32.mrb[0].mxu1 }
 0x147   : > { %v408_v9 = vadd.f32 %v1159_v2, %v407_v8  ;;  %v1215_v10 = vpop.f32.mrb[1].mxu1 }
 0x148   : > { %v410_v11 = vpop.f32.mrb[2].mxu1 }
 0x149   : > { %v413_v12 = vpack.c.bf16 %v408_v9, %v408_v9  ;;  %v1216_v13 = vpop.f32.mrb[3].mxu1  ;;  %v1569_v11 = vmov 3  }
 0x14b   : > { %415 = vst.msk [vmem:[#allocation3] sm:$0xf] %vm414_vm2, %v413_v12 }
 0x152   : > { %v1362_v14 = vld [vmem:[#allocation3] ss:$0 sps:$4 sm:$0xff]  }
 0x153   : > { %565 = vrot.lane.b32.xlu0 %v1362_v14, %s1561_s7  ;;  %v1363_v15 = vld [vmem:[#allocation3] ss:$0 sps:$4 sm:$0xff]  }
 0x154   : > { %v1364_v16 = vld [vmem:[#allocation3] ss:$0 sps:$4 sm:$0xff]  }
 0x155   : > { %v426_v27 = vld [vmem:[#allocation3] sm:$0xf] }
 0x157   : > { %707 = vrot.lane.b32.xlu0 %v1363_v15, %s1562_s21 }
 0x15b   : > { %849 = vrot.lane.b32.xlu0 %v1364_v16, %s1563_s24 }
 0x1b7   : > { %v342_v18 = vpop.f32.mrb[0].mxu0 }
 0x1b8   : > { %v343_v19 = vadd.f32 %v342_v18, %v302_v17  ;;  %v1207_v20 = vpop.f32.mrb[1].mxu0 }
 0x1b9   : > { %v345_v21 = vpop.f32.mrb[2].mxu0 }
 0x1ba   : > { %v349_v22 = vpack.c.bf16 %v343_v19, %v343_v19  ;;  %v1208_v23 = vpop.f32.mrb[3].mxu0 }
 0x1bc   : > { %355 = vst.msk [vmem:[#allocation4] sm:$0xf] %vm354_vm3, %v349_v22 }
 0x1c3   : > { %v425_v24 = vld [vmem:[#allocation4] sm:$0xf] }
 0x1c4   : > { %v432_v25 = vsel %vm427_vm4, %v425_v24, 0  ;;  %v1814_v26 = vcombine.low %v425_v24, %v425_v24 }
 0x1c5   : > { %1218 = vmatpush3.bf16.xpose.msra.mxu0 %v432_v25  ;;  %v566_v31 = vpop.permute.xlu0 %565 }
 0x1c6   : > { %567 = vrot.lane.b32.xlu1 %v1814_v26, %s1561_s7  ;;  %1229 = vmatprep.subr.bf16.mxu0 %v1559_v1  ;;  %s1465_s7 = scalar_lea.vmem %s1929_s8, 128 }
 0x1c7   : > { %p1466_p9 = scmp.ne.s32.totalorder %s1929_s8, %s1465_s7 }
 0x1c9   : > { %v708_v34 = vpop.permute.xlu0 %707  ;;  %p1467_p3 = pnand %p1466_p9, %p1995_p11 }
 0x1ca   : > { %709 = vrot.lane.b32.xlu1 %v1814_v26, %s1562_s21  ;;  %s1575_s21 = smov [#allocation13]  }
 0x1cb   : > { %p1468_p6 = pneg %p1467_p3 }
 0x1cc   : > { %1220 = vmatmul.mubr.msk.bf16.vlgmr.msra.gmra.mrb[4].mxu0 %vm427_vm4, %v426_v27 }
 0x1cd   : > { %1231 = vmatprep.mubr.msk.bf16.mxu0 %vm1560_vm1, %v1559_v1  ;;  %v850_v36 = vpop.permute.xlu0 %849 }
 0x1ce   : > { %851 = vrot.lane.b32.xlu1 %v1814_v26, %s1563_s24  ;;  %s1469_s24 = sshll.u32 %s1575_s21, 4  ;;  %s1470_s24 = int_to_ptr.vmem [resolvable:$false] %s1469_s24 }
 0x1cf   : > { %p1472_p13 = scmp.lt.s32.totalorder %s1929_s8, %s1470_s24 }
 0x238   : > { %v568_v28 = vpop.permute.xlu1 %567 }
 0x239   : > { %v573_v29 = vsel %vm427_vm4, %v568_v28, 0 }
 0x23a   : > { %1230 = vmatpush3.bf16.xpose.msra.mxu0 %v573_v29 }
 0x23b   : > { %1241 = vmatprep.subr.bf16.mxu0 %v1559_v1 }
 0x23c   : > { %v710_v30 = vpop.permute.xlu1 %709 }
 0x23d   : > { %v715_v32 = vsel %vm427_vm4, %v710_v30, 0 }
 0x240   : > { %v852_v33 = vpop.permute.xlu1 %851 }
 0x241   : > { %1232 = vmatmul.mubr.msk.bf16.vlgmr.msra.gmra.mrb[8].mxu0 %vm427_vm4, %v566_v31  ;;  %v857_v35 = vsel %vm427_vm4, %v852_v33, 0 }
 0x242   : > { %1242 = vmatpush3.bf16.xpose.msra.mxu0 %v715_v32  ;;  %1243 = vmatprep.mubr.msk.bf16.mxu0 %vm1560_vm1, %v1559_v1 }
 0x243   : > { %1253 = vmatprep.subr.bf16.mxu0 %v1559_v1 }
 0x249   : > { %1244 = vmatmul.mubr.msk.bf16.vlgmr.msra.gmra.mrb[12].mxu0 %vm427_vm4, %v708_v34 }
 0x24a   : > { %1254 = vmatpush3.bf16.xpose.msra.mxu0 %v857_v35  ;;  %1255 = vmatprep.mubr.msk.bf16.mxu0 %vm1560_vm1, %v1559_v1 }
 0x251   : > { %1256 = vmatmul.mubr.msk.bf16.vlgmr.msra.gmra.mrb[16].mxu0 %vm427_vm4, %v850_v36 }
 0x29f   : > { %v1835_v37 = vpop.f32.mrb[4].mxu0 }
 0x2a0   : > { %v1221_v38 = vpop.f32.mrb[5].mxu0  ;;  %v475_v39 = vsel %vm427_vm4, %v1835_v37, -inf }
 0x2a1   : > { %476 = vmax.xlane.f32.xlu1 %v475_v39  ;;  %v471_v40 = vpop.f32.mrb[6].mxu0 }
 0x2a2   : > { %v1222_v41 = vpop.f32.mrb[7].mxu0 }
 0x314   : > { %v1840_v44 = vpop.f32.mrb[8].mxu0 }
 0x315   : > { %v1233_v45 = vpop.f32.mrb[9].mxu0  ;;  %v616_v46 = vsel %vm427_vm4, %v1840_v44, -inf }
 0x316   : > { %617 = vmax.xlane.f32.xlu0 %v616_v46  ;;  %v612_v47 = vpop.f32.mrb[10].mxu0 }
 0x317   : > { %v1234_v48 = vpop.f32.mrb[11].mxu0 }
 0x31c   : > { %v1844_v49 = vpop.f32.mrb[12].mxu0 }
 0x31d   : > { %v1245_v50 = vpop.f32.mrb[13].mxu0  ;;  %v758_v51 = vsel %vm427_vm4, %v1844_v49, -inf }
 0x31e   : > { %759 = vmax.xlane.f32.xlu0 %v758_v51  ;;  %v754_v52 = vpop.f32.mrb[14].mxu0 }
 0x31f   : > { %v1246_v53 = vpop.f32.mrb[15].mxu0 }
 0x320   : > { %v490_v53 = vld [vmem:[#allocation6] sm:$0xff] }
 0x324   : > { %v1848_v54 = vpop.f32.mrb[16].mxu0 }
 0x325   : > { %v1257_v55 = vpop.f32.mrb[17].mxu0  ;;  %v900_v56 = vsel %vm427_vm4, %v1848_v54, -inf }
 0x326   : > { %901 = vmax.xlane.f32.xlu1 %v900_v56  ;;  %v896_v58 = vpop.f32.mrb[18].mxu0 }
 0x327   : > { %v1258_v59 = vpop.f32.mrb[19].mxu0 }
 0x32e   : > { %v477_v61 = vpop.xlane.xlu1 %476 }
 0x32f   : > { %v478_v62 = vmax.f32 %v474_v60, %v477_v61 }
 0x331   : > { %v479_v63 = vsub.f32 %v474_v60, %v478_v62  ;;  %560 = vst.msk [vmem:[#allocation5] sm:$0xff] %vm496_vm6, %v478_v62 }
 0x333   : > { %v480_v0 = vmul.f32 1.442695, %v479_v63 }
 0x334   : > { %484 = vperm.xlu0 %1350, %v478_v62  }
 0x335   : > { %1365 = vpow2.f32 %v480_v0 }
 0x338   : > { %v615_v3 = vld [vmem:[#allocation5] sm:$0xff] }
 0x33f   : > { %v1854_v2 = vpop.eup %1365 }
 0x340   : > { %554 = vperm.xlu0 %1350, %v1854_v2  }
 0x3a3   : > { %v618_v4 = vpop.xlane.xlu0 %617 }
 0x3a4   : > { %v619_v5 = vmax.f32 %v615_v3, %v618_v4 }
 0x3a6   : > { %v620_v6 = vsub.f32 %v615_v3, %v619_v5  ;;  %702 = vst.msk [vmem:[#allocation5] sm:$0xff] %vm637_vm7, %v619_v5  ;;  %625 = vperm.xlu1 %1351, %v619_v5  }
 0x3a8   : > { %v621_v21 = vmul.f32 1.442695, %v620_v6 }
 0x3aa   : > { %502 = vrot.lane.b32.xlu1 %v1814_v26, %s1558_s10 }
 0x3ab   : > { %1352 = vset.pattern.permute.xlu1 %v1567_v7  ;;  %v760_v9 = vpop.xlane.xlu0 %759 }
 0x3ad   : > { %v757_v8 = vld [vmem:[#allocation5] sm:$0xff] }
 0x3ae   : > { %v761_v10 = vmax.f32 %v757_v8, %v760_v9 }
 0x3b0   : > { %844 = vst.msk [vmem:[#allocation5] sm:$0xff] %vm779_vm8, %v761_v10  ;;  %767 = vperm.xlu1 %1352, %v761_v10   ;;  %v762_v22 = vsub.f32 %v757_v8, %v761_v10  ;;  %v551_v10 = vld [vmem:[#allocation7] sm:$0xff] }
 0x3b2   : > { %v763_v23 = vmul.f32 1.442695, %v762_v22 }
 0x3b3   : > { %v902_v13 = vpop.xlane.xlu1 %901  ;;  %v485_v16 = vpop.permute.xlu0 %484 }
 0x3b4   : > { %640 = vrot.lane.b32.xlu1 %v1814_v26, %s1568_s6  ;;  %v487_v17 = vsub.f32 %v1835_v37, %v485_v16  ;;  %s1471_s6 = scalar_lea.vmem %s1470_s24, 256 }
 0x3b5   : > { %1353 = vset.pattern.permute.xlu1 %v1569_v11  ;;  %p1473_p8 = scmp.lt.s32.totalorder %s1471_s6, %s1465_s7 }
 0x3b6   : > { %v488_v18 = vmul.f32 1.442695, %v487_v17 }
 0x3b7   : > { %v1864_v12 = vld [vmem:[#allocation5] sm:$0xff]  ;;  %p1474_p0 = por %p1473_p8, %p1472_p13 }
 0x3b8   : > { %v1867_v14 = vmax.f32 %v1864_v12, %v902_v13  ;;  %1367 = vpow2.f32 %v488_v18 }
 0x3b9   : > { %1369 = vpow2.f32 %v621_v21  ;;  %p1475_p5 = pnand %p1474_p0, %p1468_p6 }
 0x3ba   : > { %v904_v15 = vsub.f32 %v1864_v12, %v1867_v14  ;;  %986 = vst.msk [vmem:[#allocation5] sm:$0xff] %vm921_vm9, %v1867_v14  ;;  %909 = vperm.xlu1 %1353, %v1867_v14   ;;  %1371 = vpow2.f32 %v763_v23 }
 0x3be   : > { %782 = vrot.lane.b32.xlu1 %v1814_v26, %s1570_s26 }
 0x3bf   : > { %1354 = vset.pattern.permute.xlu1 %v1566_v57  ;;  %v555_v58 = vpop.permute.xlu0 %554 }
 0x3c0   : > { %v557_v13 = vmul.f32 %v555_v58, %v551_v10 }
 0x3c2   : > { %924 = vrot.lane.b32.xlu1 %v1814_v26, %s1571_s9  ;;  %v1368_v19 = vpop.eup %1367 }
 0x3c3   : > { %v492_v20 = vsel %vm427_vm4, %v1368_v19, 0.0  ;;  %v1370_v24 = vpop.eup %1369  ;;  %v498_v31 = vpack.c.bf16 %v1368_v19, %v1368_v19 }
 0x3c4   : > { %v1879_v25 = vpop.eup %1371 }
 0x3e6   : > { %493 = vadd.xlane.f32.xlu1 %v492_v20 }
 0x3f7   : > { %691 = vperm.xlu1 %1354, %v1370_v24  }
 0x3fb   : > { %1355 = vset.pattern.permute.xlu1 %v1567_v7 }
 0x3fc   : > { %833 = vperm.xlu1 %1355, %v1879_v25  }
 0x400   : > { %1356 = vset.pattern.permute.xlu1 %v1569_v11 }
 0x425   : > { %v626_v26 = vpop.permute.xlu1 %625 }
 0x426   : > { %v628_v27 = vsub.f32 %v1840_v44, %v626_v26 }
 0x428   : > { %v629_v28 = vmul.f32 1.442695, %v628_v27 }
 0x429   : > { %v503_v29 = vpop.permute.xlu1 %502 }
 0x42a   : > { %1373 = vpow2.f32 %v629_v28  ;;  %v509_v30 = vsel %vm507_vm10, %v503_v29, 0 }
 0x42b   : > { %1224 = vmatpush3.bf16.msra.mxu1 %v509_v30 }
 0x42c   : > { %1235 = vmatprep.subr.bf16.mxu1 %v1559_v1 }
 0x42e   : > { %1226 = vmatmul.mubr.msk.bf16.vlgmr.msra.gmra.mrb[4].mxu1 %vm427_vm4, %v498_v31 }
 0x42f   : > { %v768_v32 = vpop.permute.xlu1 %767  ;;  %1237 = vmatprep.mubr.msk.bf16.mxu1 %vm1560_vm1, %v1559_v1 }
 0x430   : > { %v770_v33 = vsub.f32 %v1844_v49, %v768_v32 }
 0x432   : > { %v771_v34 = vmul.f32 1.442695, %v770_v33 }
 0x433   : > { %v641_v35 = vpop.permute.xlu1 %640 }
 0x434   : > { %v1374_v36 = vpop.eup %1373  ;;  %1375 = vpow2.f32 %v771_v34  ;;  %v646_v37 = vsel %vm507_vm10, %v641_v35, 0 }
 0x435   : > { %1236 = vmatpush3.bf16.msra.mxu1 %v646_v37  ;;  %v633_v38 = vsel %vm427_vm4, %v1374_v36, 0.0  ;;  %v639_v39 = vpack.c.bf16 %v1374_v36, %v1374_v36 }
 0x436   : > { %634 = vadd.xlane.f32.xlu0 %v633_v38  ;;  %1247 = vmatprep.subr.bf16.mxu1 %v1559_v1 }
 0x438   : > { %1238 = vmatmul.mubr.msk.bf16.vlgmr.msra.gmra.mrb[8].mxu1 %vm427_vm4, %v639_v39 }
 0x439   : > { %v910_v40 = vpop.permute.xlu1 %909  ;;  %1249 = vmatprep.mubr.msk.bf16.mxu1 %vm1560_vm1, %v1559_v1 }
 0x43a   : > { %v912_v41 = vsub.f32 %v1848_v54, %v910_v40  ;;  %v491_v54 = vmul.f32 %v1854_v2, %v490_v53 }
 0x43c   : > { %v913_v42 = vmul.f32 1.442695, %v912_v41 }
 0x43d   : > { %v783_v43 = vpop.permute.xlu1 %782 }
 0x43e   : > { %v1376_v44 = vpop.eup %1375  ;;  %1377 = vpow2.f32 %v913_v42  ;;  %v788_v45 = vsel %vm507_vm10, %v783_v43, 0 }
 0x43f   : > { %1248 = vmatpush3.bf16.msra.mxu1 %v788_v45  ;;  %v775_v46 = vsel %vm427_vm4, %v1376_v44, 0.0  ;;  %v781_v47 = vpack.c.bf16 %v1376_v44, %v1376_v44 }
 0x440   : > { %776 = vadd.xlane.f32.xlu0 %v775_v46  ;;  %1259 = vmatprep.subr.bf16.mxu1 %v1559_v1 }
 0x441   : > { %v925_v48 = vpop.permute.xlu1 %924 }
 0x442   : > { %v930_v49 = vsel %vm507_vm10, %v925_v48, 0  ;;  %1250 = vmatmul.mubr.msk.bf16.vlgmr.msra.gmra.mrb[12].mxu1 %vm427_vm4, %v781_v47 }
 0x443   : > { %1260 = vmatpush3.bf16.msra.mxu1 %v930_v49  ;;  %1261 = vmatprep.mubr.msk.bf16.mxu1 %vm1560_vm1, %v1559_v1  ;;  %v905_v1 = vmul.f32 1.442695, %v904_v15 }
 0x445   : > { %1379 = vpow2.f32 %v905_v1 }
 0x448   : > { %v1378_v50 = vpop.eup %1377 }
 0x449   : > { %v917_v51 = vsel %vm427_vm4, %v1378_v50, 0.0  ;;  %v923_v52 = vpack.c.bf16 %v1378_v50, %v1378_v50 }
 0x44a   : > { %918 = vadd.xlane.f32.xlu0 %v917_v51 }
 0x44b   : > { %1262 = vmatmul.mubr.msk.bf16.vlgmr.msra.gmra.mrb[16].mxu1 %vm427_vm4, %v923_v52 }
 0x44f   : > { %v1380_v4 = vpop.eup %1379 }
 0x473   : > { %v494_v55 = vpop.xlane.xlu1 %493 }
 0x474   : > { %v495_v56 = vadd.f32 %v494_v55, %v491_v54 }
 0x476   : > { %497 = vst.msk [vmem:[#allocation6] sm:$0xff] %vm496_vm6, %v495_v56 }
 0x477   : > { %v692_v32 = vpop.permute.xlu1 %691 }
 0x47b   : > { %v834_v36 = vpop.permute.xlu1 %833 }
 0x47d   : > { %v631_v59 = vld [vmem:[#allocation6] sm:$0xff] }
 0x47e   : > { %v632_v60 = vmul.f32 %v1370_v24, %v631_v59 }
 0x4c3   : > { %v635_v61 = vpop.xlane.xlu0 %634 }
 0x4c4   : > { %v636_v62 = vadd.f32 %v635_v61, %v632_v60 }
 0x4c6   : > { %638 = vst.msk [vmem:[#allocation6] sm:$0xff] %vm637_vm7, %v636_v62 }
 0x4cd   : > { %v773_v63 = vld [vmem:[#allocation6] sm:$0xff]  ;;  %v777_v2 = vpop.xlane.xlu0 %776 }
 0x4ce   : > { %v774_v0 = vmul.f32 %v1879_v25, %v773_v63 }
 0x4d0   : > { %v778_v3 = vadd.f32 %v777_v2, %v774_v0 }
 0x4d2   : > { %780 = vst.msk [vmem:[#allocation6] sm:$0xff] %vm779_vm8, %v778_v3 }
 0x4d7   : > { %v919_v8 = vpop.xlane.xlu0 %918 }
 0x4d9   : > { %v915_v5 = vld [vmem:[#allocation6] sm:$0xff] }
 0x4da   : > { %v916_v6 = vmul.f32 %v1380_v4, %v915_v5 }
 0x4dc   : > { %v920_v9 = vadd.f32 %v919_v8, %v916_v6 }
 0x4de   : > { %922 = vst.msk [vmem:[#allocation6] sm:$0xff] %vm921_vm9, %v920_v9 }
 0x4e5   : > { %v990_v12 = vld [vmem:[#allocation6] sm:$0xff] }
 0x4e6   : > { %1381 = vrcp.f32 %v990_v12 }
 0x4f0   : > { %v1382_v23 = vpop.eup %1381 }
 0x501   : > { %v545_v16 = vpop.f32.mrb[4].mxu1 }
 0x502   : > { %v558_v14 = vadd.f32 %v557_v13, %v545_v16  ;;  %v1227_v15 = vpop.f32.mrb[5].mxu1 }
 0x503   : > { %v548_v17 = vpop.f32.mrb[6].mxu1 }
 0x504   : > { %559 = vst.msk [vmem:[#allocation7] sm:$0xff] %vm427_vm4, %v558_v14  ;;  %v1228_v18 = vpop.f32.mrb[7].mxu1 }
 0x50b   : > { %v682_v19 = vpop.f32.mrb[8].mxu1 }
 0x50c   : > { %v1239_v20 = vpop.f32.mrb[9].mxu1  ;;  %696 = vrot.lane.b32.xlu0 %v682_v19, %s1572_s14 }
 0x50d   : > { %v685_v21 = vpop.f32.mrb[10].mxu1 }
 0x50e   : > { %v1240_v22 = vpop.f32.mrb[11].mxu1 }
 0x510   : > { %995 = vperm.xlu0 %1350, %v1382_v23  }
 0x514   : > { %1358 = vset.pattern.permute.xlu0 %v1567_v7  ;;  %v688_v7 = vld [vmem:[#allocation7] sm:$0xff] }
 0x515   : > { %v824_v24 = vpop.f32.mrb[12].mxu1  ;;  %1005 = vperm.xlu0 %1358, %v1382_v23   ;;  %v694_v33 = vmul.f32 %v692_v32, %v688_v7 }
 0x516   : > { %838 = vrot.lane.b32.xlu1 %v824_v24, %s1573_s22  ;;  %v1251_v25 = vpop.f32.mrb[13].mxu1 }
 0x517   : > { %v827_v26 = vpop.f32.mrb[14].mxu1 }
 0x518   : > { %v1252_v27 = vpop.f32.mrb[15].mxu1 }
 0x519   : > { %1360 = vset.pattern.permute.xlu0 %v1569_v11 }
 0x51a   : > { %975 = vperm.xlu1 %1356, %v1380_v4  }
 0x51e   : > { %v966_v28 = vpop.f32.mrb[16].mxu1  ;;  %1357 = vset.pattern.permute.xlu1 %v1566_v57 }
 0x51f   : > { %980 = vrot.lane.b32.xlu1 %v966_v28, %s1574_s27  ;;  %v1263_v29 = vpop.f32.mrb[17].mxu1 }
 0x520   : > { %v969_v30 = vpop.f32.mrb[18].mxu1 }
 0x521   : > { %v1264_v31 = vpop.f32.mrb[19].mxu1 }
 0x523   : > { %1000 = vperm.xlu1 %1357, %v1382_v23  }
 0x527   : > { %1359 = vset.pattern.permute.xlu1 %v1569_v11 }
 0x528   : > { %1010 = vperm.xlu1 %1359, %v1382_v23  }
 0x57e   : > { %v697_v34 = vpop.permute.xlu0 %696 }
 0x57f   : > { %v699_v35 = vadd.f32 %v697_v34, %v694_v33 }
 0x581   : > { %701 = vst.msk [vmem:[#allocation7] sm:$0xff] %vm700_vm11, %v699_v35 }
 0x588   : > { %v830_v37 = vld [vmem:[#allocation7] sm:$0xff]  ;;  %v839_v57 = vpop.permute.xlu1 %838 }
 0x589   : > { %v836_v38 = vmul.f32 %v834_v36, %v830_v37 }
 0x58b   : > { %v841_v39 = vadd.f32 %v839_v57, %v836_v38 }
 0x58d   : > { %843 = vst.msk [vmem:[#allocation7] sm:$0xff] %vm842_vm12, %v841_v39 }
 0x58f   : > { %v996_v44 = vpop.permute.xlu0 %995 }
 0x594   : > { %v972_v41 = vld [vmem:[#allocation7] sm:$0xff]  ;;  %v1006_v46 = vpop.permute.xlu0 %1005 }
 0x599   : > { %v976_v40 = vpop.permute.xlu1 %975 }
 0x59a   : > { %v978_v11 = vmul.f32 %v976_v40, %v972_v41 }
 0x59d   : > { %v981_v42 = vpop.permute.xlu1 %980 }
 0x59e   : > { %v983_v43 = vadd.f32 %v981_v42, %v978_v11 }
 0x5a0   : > { %985 = vst.msk [vmem:[#allocation7] sm:$0xff] %vm984_vm13, %v983_v43 }
 0x5a2   : > { %v1001_v45 = vpop.permute.xlu1 %1000 }
 0x5a7   : > { %v992_v47 = vld [vmem:[#allocation7] sm:$0xff]  ;;  %v1011_v48 = vpop.permute.xlu1 %1010 }
 0x5a8   : > { %v998_v49 = vmul.f32 %v996_v44, %v992_v47  ;;  %v1008_v50 = vmul.f32 %v1006_v46, %v992_v47  ;;  %v1003_v51 = vmul.f32 %v1001_v45, %v992_v47  ;;  %v1013_v53 = vmul.f32 %v1011_v48, %v992_v47 }
 0x5aa   : > { %v1014_v52 = vsel %vm427_vm4, %v998_v49, %v1003_v51 }
 0x5ab   : > { %v1016_v54 = vsel %vm1015_vm14, %v1014_v52, %v1008_v50 }
 0x5ac   : > { %v1018_v55 = vsel %vm1017_vm15, %v1016_v54, %v1013_v53 }
 0x5ad   : > { %1020 = vst.msk [vmem:[%s1773_s11] sm:$0xff] %vm304_vm0, %v1018_v55 }
 0x5ae   : > { %1478 = shalt.err (!%p1475_p5)
}
 0x5af   : > { %s1479_s12 = scalar_lea.hbm %s1927_s5, 128  ;;  %s1483_s9 = scalar_lea.hbm %s1982_s4, 256 }
 0x5b0   : > { %p1480_p7 = scmp.ne.s32.totalorder %s1927_s5, %s1479_s12  ;;  %p1484_p12 = scmp.lt.u32.totalorder %s1927_s5, %s1982_s4 }
 0x5b1   : > { %p1485_p1 = scmp.lt.u32.totalorder %s1483_s9, %s1479_s12  ;;  %p1487_p9 = scmp.lt.u32.totalorder %s1479_s12, %s1927_s5 }
 0x5b2   : > { %p1481_p4 = pnand %p1480_p7, %p1995_p11 }
 0x5b3   : > { %p1486_p2 = por %p1485_p1, %p1484_p12 }
 0x5b4   : > { %p1482_p10 = pneg %p1481_p4 }
 0x5b5   : > { %p1488_p3 = por %p1487_p9, %p1486_p2 }
 0x5b7   : > { %p1489_p6 = pnand %p1488_p3, %p1482_p10 }
 0x5b9   : > { %1492 = shalt.err (!%p1489_p6)
}
 0x5ba   : > { %1269 = dma.vmem_to_hbm [thread:$0]  (%p1995_p11), %s1929_s8, 128, %s1927_s5, %s1022_s18  }
 0x5bb PF: > { %s1048_s27 = sand.u32 1, %s1533_s15   ;;  %p1996_p13 = scmp.ne.s32.totalorder %s1988_s30, 0 }
 0x5bc   : > { %p1997_p8 = scmp.ge.s32.totalorder %s1553_s20, 2  ;;  %s1049_s13 = scalar_lea.sflag [#allocation10], %s1048_s27 }
 0x5be   : > { %p1279_p0 = pnand %p1997_p8, %p1996_p13 }
 0x5c0   : > { %1528 = dma.done.wait (!%p1279_p0), %s1049_s13, 128  }
 0x5c1   : > { %1530 = vsyncadd (!%p1279_p0), %s1049_s13, 4294967168  ;;  %s23_s20 = sadd.s32 1, %s1553_s20   ;;  %s1998_s15 = smov %s1537_s16 }
 0x5c2   : > { %p20_p5 = scmp.ge.s32.totalorder %s23_s20, 4   ;;  %s1999_s16 = smov %s1541_s17 }
 0x5c3   : > { %s2000_s17 = smov %s1657_s29  ;;  %s2001_s18 = smov %s1549_s19 }
 0x5c4   : > { %s2002_s19 = smov %s2004_s23  ;;  %22 = sbr.rel (!%p20_p5) target bundleno = 8 (0x8), region = 113 }
 0x5cb   :  { %1054 = vsyncpa [#allocation9], 1 }
 0x5cc   :  { %1056 = vsyncpa [#allocation9 + $0x1], 1 }
 0x5cd   :  { %1057 = vsyncpa [#allocation12], 1 }
 0x5ce   :  { %1059 = vsyncpa [#allocation12 + $0x1], 1 }
 0x5cf   :  { %1060 = vsyncpa [#allocation10], 1 }
 0x5d0   :  { %1062 = vsyncpa [#allocation10 + $0x1], 1 }

</bundles_post_ra>
